<compile_context>
chip_gen: v7x
topology: tpu7x:2x2x1
jax: 0.10.0
libtpu: 0.0.40
codegen_flags: <defaults>
</compile_context>

<pallas_src>
import functools

import jax
import jax.numpy as jnp
from jax.experimental import pallas as pl
from jax.experimental.pallas import tpu as pltpu


def conv3x3_lrelu_kernel(x_ref, w_ref, b_ref, o_ref, lhs_ref):
    """One batch-block of Bt images per grid step.

    x_ref:   (Bt, H, K)     folded input block, K = Cin*W (compute dtype)
    w_ref:   (3*K, N)       fused block-Toeplitz weights, N = Cout*W (resident)
    b_ref:   (1, N)         width-replicated bias (f32, resident)
    o_ref:   (Bt, H, N)     folded output block
    lhs_ref: (Bt, H, 3*K)   VMEM scratch holding the fused (im2row) LHS
    """
    Bt, H, K = x_ref.shape
    N = o_ref.shape[-1]

    x = x_ref[...]                                     # (Bt, H, K)
    zrow = jnp.zeros((Bt, 1, K), dtype=x.dtype)

    # Assemble [x[h-1] | x[h] | x[h+1]] per output row; the zero boundary strips
    # implement pad=1 for the top/bottom taps (no wrapper jnp.pad pass needed).
    lhs_ref[:, :, K:2 * K] = x                         # centre tap  (kh = 1)
    lhs_ref[:, 1:, 0:K] = x[:, :-1, :]                 # top tap     (kh = 0)
    lhs_ref[:, 0:1, 0:K] = zrow
    lhs_ref[:, :-1, 2 * K:3 * K] = x[:, 1:, :]         # bottom tap  (kh = 2)
    lhs_ref[:, H - 1:H, 2 * K:3 * K] = zrow

    lhs = lhs_ref[...].reshape(Bt * H, 3 * K)          # contiguous collapse -> view

    # Single fused MXU matmul (M = Bt*H, K = 3*Cin*W, N = Cout*W), f32 accumulation.
    acc = jnp.dot(lhs, w_ref[...], preferred_element_type=jnp.float32)
    acc = acc + b_ref[...]                             # (1, N) broadcast over rows
    acc = jnp.where(acc >= 0, acc, 0.01 * acc)         # LeakyReLU, PyTorch default 0.01
    o_ref[...] = acc.reshape(Bt, H, N).astype(o_ref.dtype)


def _toeplitz_weights(weight_oihw, W, compute_dtype):
    """Fold the 3 width taps + the width zero-padding into a (3*Cin*W, Cout*W) matrix.

    w_full[kh*Cin*W + ci*W + wi, co*W + w] = weight[co, ci, kh, wi - w + 1]
                                             if 0 <= wi - w + 1 <= 2 else 0
    """
    Cout, Cin, _, _ = weight_oihw.shape
    w_off = jnp.arange(W)[None, :] - jnp.arange(W)[:, None] + 1       # [w_out, w_in] -> kw
    valid = (w_off >= 0) & (w_off <= 2)
    w_g = weight_oihw[:, :, :, jnp.clip(w_off, 0, 2)]                 # (Cout,Cin,3,Wo,Wi)
    w_g = jnp.where(valid[None, None, None], w_g, 0.0)
    # (co, ci, kh, w, wi) -> (kh, ci, wi, co, w) -> (3*Cin*W, Cout*W)
    w_full = jnp.transpose(w_g, (2, 1, 4, 0, 3)).reshape(3 * Cin * W, Cout * W)
    return w_full.astype(compute_dtype)


def prepare_conv_block_params(weight_oihw, bias, W, compute_dtype=jnp.bfloat16):
    """Toeplitz-expanded weights + folded bias.

    For inference / repeated forward calls, cache this result per weight update
    instead of re-expanding on every call (the expansion is a few extra XLA ops).
    """
    Cout = weight_oihw.shape[0]
    w_full = _toeplitz_weights(weight_oihw, W, compute_dtype)
    b_fold = jnp.repeat(bias.astype(jnp.float32), W).reshape(1, Cout * W)
    return w_full, b_fold


def _pick_batch_tile(B, H, target_rows=256):
    """Largest divisor of B with Bt*H <= target_rows (v6e/v7x MXU is 256 rows deep)."""
    # TODO(synk): on v7x (2 TensorCores/chip) prefer Bt <= B//2 (or pl.core_map /
    # CORE_PARALLEL) once B is large enough, so both cores receive grid steps.
    bt = max(1, min(B, max(1, target_rows // max(H, 1))))
    while B % bt:
        bt -= 1
    return bt


def conv_block_fused(x_fold, w_full, b_fold, *, out_dtype=jnp.float32):
    """Fused 3x3 conv (stride=1, pad=1, bias) + LeakyReLU on the folded layout.

    x_fold: (B, H, Cin*W) activations, lane index = ci*W + wi (compute dtype)
    w_full: (3*Cin*W, Cout*W) Toeplitz weights;  b_fold: (1, Cout*W) f32 bias
    Returns (B, H, Cout*W) in out_dtype.  Chain multiple ConvBlocks in this layout.
    """
    B, H, K = x_fold.shape
    K3, N = w_full.shape
    assert K3 == 3 * K, (K3, K)

    Bt = _pick_batch_tile(B, H)
    grid = (B // Bt,)

    # VMEM budget guard: the Toeplitz weight is quadratic in W and v7x has only
    # 64 MiB of VMEM per TensorCore (test shapes here use ~0.1 MiB total).
    in_it = jnp.dtype(x_fold.dtype).itemsize
    footprint = (2 * Bt * H * K * in_it                                # input (x2 buf)
                 + 2 * Bt * H * N * jnp.dtype(out_dtype).itemsize      # output (x2 buf)
                 + 3 * K * N * jnp.dtype(w_full.dtype).itemsize        # weights (x1, Buffered(1))
                 + N * 4                                               # bias
                 + Bt * H * 3 * K * in_it)                             # fused-LHS scratch
    # TODO(synk): for large Cin/Cout/W, tile the folded W lane axis (or fall back to a
    # channels-last K=9*Cin formulation) instead of refusing to run.
    assert footprint <= 32 * 1024 * 1024, f"conv blocks too large for VMEM: {footprint} B"

    return pl.pallas_call(
        conv3x3_lrelu_kernel,
        out_shape=jax.ShapeDtypeStruct((B, H, N), out_dtype),
        grid_spec=pltpu.PrefetchScalarGridSpec(
            num_scalar_prefetch=0,
            grid=grid,
            in_specs=[
                pl.BlockSpec((Bt, H, K), lambda b: (b, 0, 0)),
                # Constant index_map + single buffer: DMA'd once, stays resident.
                pl.BlockSpec((3 * K, N), lambda b: (0, 0),
                             pipeline_mode=pl.Buffered(1)),
                pl.BlockSpec((1, N), lambda b: (0, 0),
                             pipeline_mode=pl.Buffered(1)),
            ],
            out_specs=pl.BlockSpec((Bt, H, N), lambda b: (b, 0, 0)),
            scratch_shapes=[pltpu.VMEM((Bt, H, 3 * K), x_fold.dtype)],
        ),
        compiler_params=pltpu.CompilerParams(
            dimension_semantics=("parallel",),
            vmem_limit_bytes=48 * 1024 * 1024,   # comfortable headroom under v7x's 64 MiB
        ),
    )(x_fold, w_full, b_fold)


def conv_block_forward(x_nchw, weight_oihw, bias, *, compute_dtype=jnp.bfloat16):
    """PyTorch-equivalent ConvBlock.forward: NCHW in -> NCHW out.

    The NCHW <-> folded transposes belong only at the network boundary; a stack of
    ConvBlocks should stay in the folded (B, H, C*W) layout via conv_block_fused.
    Use compute_dtype=jnp.float32 to match PyTorch float32 numerics exactly.
    """
    B, Cin, H, W = x_nchw.shape
    Cout = weight_oihw.shape[0]
    # (B,Cin,H,W) -> (B,H,Cin,W) -> (B,H,Cin*W): innermost W stays contiguous.
    x_fold = jnp.transpose(x_nchw, (0, 2, 1, 3)).reshape(B, H, Cin * W)
    w_full, b_fold = prepare_conv_block_params(weight_oihw, bias, W, compute_dtype)
    out_fold = conv_block_fused(x_fold.astype(compute_dtype), w_full, b_fold,
                                out_dtype=x_nchw.dtype)
    # (B, H, Cout*W) -> (B, H, Cout, W) -> (B, Cout, H, W)
    return jnp.transpose(out_fold.reshape(B, H, Cout, W), (0, 2, 1, 3))


if __name__ == "__main__":
    # Small shapes: B=2, Cin=4, Cout=8, H=W=16 (input BxCxHxW like the PyTorch module).
    B, Cin, Cout, H, W = 2, 4, 8, 16, 16

    key = jax.random.PRNGKey(0)
    kx, kw, kb = jax.random.split(key, 3)

    x = jax.random.normal(kx, (B, Cin, H, W), dtype=jnp.float32)
    # Deterministic params (Kaiming-uniform-ish bound like nn.Conv2d default), OIHW layout.
    fan_in = Cin * 3 * 3
    bound = 1.0 / (fan_in ** 0.5)
    weight_oihw = jax.random.uniform(kw, (Cout, Cin, 3, 3), jnp.float32,
                                     minval=-bound, maxval=bound)
    bias = jax.random.uniform(kb, (Cout,), jnp.float32, minval=-bound, maxval=bound)

    # Pure-JAX reference (same math as torch conv2d(pad=1) + leaky_relu(0.01)).
    ref = jax.lax.conv_general_dilated(
        x, weight_oihw, window_strides=(1, 1), padding=((1, 1), (1, 1)),
        dimension_numbers=("NCHW", "OIHW", "NCHW"))
    ref = ref + bias.reshape(1, Cout, 1, 1)
    ref = jnp.where(ref >= 0, ref, 0.01 * ref)

    fwd_f32 = jax.jit(functools.partial(conv_block_forward, compute_dtype=jnp.float32))
    fwd_bf16 = jax.jit(functools.partial(conv_block_forward, compute_dtype=jnp.bfloat16))

    # f32 operand path: matches PyTorch float32 numerics.
    out_f32 = jax.block_until_ready(fwd_f32(x, weight_oihw, bias))
    assert out_f32.shape == (B, Cout, H, W)
    assert jnp.allclose(out_f32, ref, atol=1e-4, rtol=1e-4)

    # Default bf16 operand / f32 accumulation fast path (looser tolerance vs f32 ref).
    out_bf16 = jax.block_until_ready(fwd_bf16(x, weight_oihw, bias))
    assert out_bf16.shape == (B, Cout, H, W)
    assert jnp.allclose(out_bf16, ref, atol=5e-2, rtol=5e-2)

    print("KERNEL_OK")
</pallas_src>

<mosaic_0001>
module attributes {stable_mosaic.version = 11 : i64} {
  func.func @conv3x3_lrelu_kernel(%arg0: i32, %arg1: memref<2x16x64xf32, #tpu.memory_space<vmem>>, %arg2: memref<192x128xf32, #tpu.memory_space<vmem>>, %arg3: memref<1x128xf32, #tpu.memory_space<vmem>>, %arg4: memref<2x16x128xf32, #tpu.memory_space<vmem>>, %arg5: memref<2x16x192xf32, #tpu.memory_space<vmem>>) attributes {dimension_semantics = [#tpu.dimension_semantics<parallel>], iteration_bounds = array<i64: 1>, scalar_prefetch = 0 : i64, scratch_operands = 1 : i64, tpu.core_type = #tpu.core_type<tc>, window_params = [{transform_indices = @transform_0, window_bounds = array<i64: 2, 16, 64>}, {pipeline_mode = #tpu.pipeline_mode<synchronous>, transform_indices = @transform_1, window_bounds = array<i64: 192, 128>}, {pipeline_mode = #tpu.pipeline_mode<synchronous>, transform_indices = @transform_2, window_bounds = array<i64: 1, 128>}, {transform_indices = @transform_3, window_bounds = array<i64: 2, 16, 128>}]} {
    %c0 = arith.constant 0 : index
    %c0_0 = arith.constant 0 : index
    %c0_1 = arith.constant 0 : index
    %0 = vector.load %arg1[%c0, %c0_0, %c0_1] : memref<2x16x64xf32, #tpu.memory_space<vmem>>, vector<2x16x64xf32>
    %cst = arith.constant 0.000000e+00 : f32
    %1 = vector.broadcast %cst : f32 to vector<2x1x64xf32>
    %c0_2 = arith.constant 0 : index
    %c0_3 = arith.constant 0 : index
    %c64 = arith.constant 64 : index
    %2 = vector.load %arg5[%c0_2, %c0_3, %c64] : memref<2x16x192xf32, #tpu.memory_space<vmem>>, vector<2x16x64xf32>
    tpu.vector_store %arg5[%c0_2, %c0_3, %c64], %0 {strides = array<i32>} : memref<2x16x192xf32, #tpu.memory_space<vmem>>, vector<2x16x64xf32>,
    %3 = vector.extract_strided_slice %0 {offsets = [0, 0, 0], sizes = [2, 15, 64], strides = [1, 1, 1]} : vector<2x16x64xf32> to vector<2x15x64xf32>
    %c0_4 = arith.constant 0 : index
    %c1 = arith.constant 1 : index
    %c0_5 = arith.constant 0 : index
    %4 = vector.load %arg5[%c0_4, %c1, %c0_5] : memref<2x16x192xf32, #tpu.memory_space<vmem>>, vector<2x15x64xf32>
    tpu.vector_store %arg5[%c0_4, %c1, %c0_5], %3 {strides = array<i32>} : memref<2x16x192xf32, #tpu.memory_space<vmem>>, vector<2x15x64xf32>,
    %c0_6 = arith.constant 0 : index
    %c0_7 = arith.constant 0 : index
    %c0_8 = arith.constant 0 : index
    %5 = vector.load %arg5[%c0_6, %c0_7, %c0_8] : memref<2x16x192xf32, #tpu.memory_space<vmem>>, vector<2x1x64xf32>
    tpu.vector_store %arg5[%c0_6, %c0_7, %c0_8], %1 {strides = array<i32>} : memref<2x16x192xf32, #tpu.memory_space<vmem>>, vector<2x1x64xf32>,
    %6 = vector.extract_strided_slice %0 {offsets = [0, 1, 0], sizes = [2, 15, 64], strides = [1, 1, 1]} : vector<2x16x64xf32> to vector<2x15x64xf32>
    %c0_9 = arith.constant 0 : index
    %c0_10 = arith.constant 0 : index
    %c128 = arith.constant 128 : index
    %7 = vector.load %arg5[%c0_9, %c0_10, %c128] : memref<2x16x192xf32, #tpu.memory_space<vmem>>, vector<2x15x64xf32>
    tpu.vector_store %arg5[%c0_9, %c0_10, %c128], %6 {strides = array<i32>} : memref<2x16x192xf32, #tpu.memory_space<vmem>>, vector<2x15x64xf32>,
    %c0_11 = arith.constant 0 : index
    %c15 = arith.constant 15 : index
    %c128_12 = arith.constant 128 : index
    %8 = vector.load %arg5[%c0_11, %c15, %c128_12] : memref<2x16x192xf32, #tpu.memory_space<vmem>>, vector<2x1x64xf32>
    tpu.vector_store %arg5[%c0_11, %c15, %c128_12], %1 {strides = array<i32>} : memref<2x16x192xf32, #tpu.memory_space<vmem>>, vector<2x1x64xf32>,
    %c0_13 = arith.constant 0 : index
    %c0_14 = arith.constant 0 : index
    %c0_15 = arith.constant 0 : index
    %9 = vector.load %arg5[%c0_13, %c0_14, %c0_15] : memref<2x16x192xf32, #tpu.memory_space<vmem>>, vector<2x16x192xf32>
    %10 = vector.shape_cast %9 : vector<2x16x192xf32> to vector<32x192xf32>
    %c0_16 = arith.constant 0 : index
    %c0_17 = arith.constant 0 : index
    %11 = vector.load %arg2[%c0_16, %c0_17] : memref<192x128xf32, #tpu.memory_space<vmem>>, vector<192x128xf32>
    %cst_18 = arith.constant dense<0.000000e+00> : vector<32x128xf32>
    %12 = tpu.matmul %10, %11, %cst_18 {dimension_numbers = #tpu.dot_dimension_numbers<[1], [0], [0], [1], [0, 0, 1, 1], [], []>} : vector<32x192xf32>, vector<192x128xf32>, vector<32x128xf32> -> vector<32x128xf32>
    %c0_19 = arith.constant 0 : index
    %c0_20 = arith.constant 0 : index
    %13 = vector.load %arg3[%c0_19, %c0_20] : memref<1x128xf32, #tpu.memory_space<vmem>>, vector<1x128xf32>
    %14 = vector.broadcast %13 : vector<1x128xf32> to vector<32x128xf32>
    %15 = arith.addf %12, %14 : vector<32x128xf32>
    %cst_21 = arith.constant 0.000000e+00 : f32
    %16 = vector.broadcast %cst_21 : f32 to vector<32x128xf32>
    %17 = arith.cmpf oge, %15, %16 : vector<32x128xf32>
    %cst_22 = arith.constant 0.00999999977 : f32
    %18 = vector.broadcast %cst_22 : f32 to vector<32x128xf32>
    %19 = arith.mulf %18, %15 : vector<32x128xf32>
    %20 = arith.select %17, %15, %19 : vector<32x128xi1>, vector<32x128xf32>
    %21 = vector.shape_cast %20 : vector<32x128xf32> to vector<2x16x128xf32>
    %c0_23 = arith.constant 0 : index
    %c0_24 = arith.constant 0 : index
    %c0_25 = arith.constant 0 : index
    %22 = vector.load %arg4[%c0_23, %c0_24, %c0_25] : memref<2x16x128xf32, #tpu.memory_space<vmem>>, vector<2x16x128xf32>
    tpu.vector_store %arg4[%c0_23, %c0_24, %c0_25], %21 {strides = array<i32>} : memref<2x16x128xf32, #tpu.memory_space<vmem>>, vector<2x16x128xf32>,
    return
  }
  func.func @transform_0(%arg0: i32) -> (i32, i32, i32) {
    %c0_i32 = arith.constant 0 : i32
    %c0_i32_0 = arith.constant 0 : i32
    %c0_i32_1 = arith.constant 0 : i32
    return %arg0, %c0_i32, %c0_i32_0 : i32, i32, i32
  }
  func.func @transform_1(%arg0: i32) -> (i32, i32) {
    %c0_i32 = arith.constant 0 : i32
    %c0_i32_0 = arith.constant 0 : i32
    %c0_i32_1 = arith.constant 0 : i32
    return %c0_i32, %c0_i32_0 : i32, i32
  }
  func.func @transform_2(%arg0: i32) -> (i32, i32) {
    %c0_i32 = arith.constant 0 : i32
    %c0_i32_0 = arith.constant 0 : i32
    %c0_i32_1 = arith.constant 0 : i32
    return %c0_i32, %c0_i32_0 : i32, i32
  }
  func.func @transform_3(%arg0: i32) -> (i32, i32, i32) {
    %c0_i32 = arith.constant 0 : i32
    %c0_i32_0 = arith.constant 0 : i32
    %c0_i32_1 = arith.constant 0 : i32
    return %arg0, %c0_i32, %c0_i32_0 : i32, i32, i32
  }
}

</mosaic_0001>

<bundles_post_ra>
// kernel: conv_block_forward.1
= control target key start
LH: loop header
LB: loop body
LE: loop exit
PB: predicated region body
PF: predicated region fallthrough
CT: control target
= control target key end

     0   :  { %vm52_vm0 = vcmask 523264   ;;  %vm59_vm1 = vcmask 1046528   ;;  %vm71_vm2 = vcmask 522240   ;;  %v301_v3 = vmov 0.0|0.0   ;;  %s302_s18 = smov 64   ;;  %s491_s0 = inlined_call_operand.vmem [shape: f32[2,16,64], index: 0, kind: input, shape index: {}]   ;;  %s492_s1 = inlined_call_operand.vmem [shape: f32[192,128], index: 1, kind: input, shape index: {}]   ;;  %s493_s2 = inlined_call_operand.vmem [shape: f32[1,128], index: 2, kind: input, shape index: {}]   ;;  %s494_s3 = inlined_call_operand.vmem [shape: f32[2,16,128], index: 3, kind: output, shape index: {}]  }
   0x1   :  { %v327_v0 = vld [vmem:[%s491_s0] sm:$0xff]  ;;  %v15_v1 = vld [vmem:[%s491_s0 + $0x8] sm:$0xff]  ;;  %v335_v2 = vld [vmem:[%s491_s0 + $0x10] sm:$0xff]  ;;  %238 = vmatprep.subr.bf16.mxu0 %v301_v3  ;;  %274 = vmatprep.subr.bf16.mxu1 %v301_v3  ;;  %vm56_vm3 = vcmask 516096   ;;  %vm39_vm4 = vcmask 1040384   ;;  %v303_v20 = vmov 0.0  }
   0x2   :  { %22 = vrot.lane.b32.xlu0 %v327_v0, %s302_s18  ;;  %v40_v4 = vrot.slane %v327_v0, 7  ;;  %v60_v5 = vrot.slane %v327_v0, 1  ;;  %24 = vrot.lane.b32.xlu1 %v15_v1, %s302_s18  ;;  %v41_v6 = vrot.slane %v15_v1, 7  ;;  %v61_v7 = vrot.slane %v15_v1, 1  ;;  %v17_v8 = vld [vmem:[%s491_s0 + $0x18] sm:$0xff]  ;;  %v85_v9 = vld [vmem:[%s492_s1] sm:$0xff] }
   0x3   :  { %v43_v10 = vrot.slane %v335_v2, 7  ;;  %v63_v11 = vrot.slane %v335_v2, 1  ;;  %v44_v12 = vrot.slane %v17_v8, 7  ;;  %v64_v13 = vrot.slane %v17_v8, 1  ;;  %v86_v14 = vld [vmem:[%s492_s1 + $0x8] sm:$0xff]  ;;  %v87_v17 = vld [vmem:[%s492_s1 + $0x10] sm:$0xff] }
   0x4   :  { %v62_v15 = vsel %vm59_vm1, %v60_v5, %v61_v7  ;;  %72 = vst.msk [vmem:[#allocation2 + $0x18] sm:$0x7f] %vm71_vm2, %v61_v7  ;;  %v239_v16 = vpack.c.bf16 %v86_v14, %v85_v9  ;;  %v88_v18 = vld [vmem:[%s492_s1 + $0x18] sm:$0xff]  ;;  %v370_v21 = vsel %vm39_vm4, %v40_v4, %v41_v6  ;;  %v89_v24 = vld [vmem:[%s492_s1 + $0x20] sm:$0xff]  ;;  %v90_v25 = vld [vmem:[%s492_s1 + $0x28] sm:$0xff]  ;;  %vm34_vm5 = vcmask 1048064  }
   0x5   :  { %70 = vst.msk [vmem:[#allocation2 + $0x8] sm:$0xff] %vm52_vm0, %v62_v15  ;;  %v65_v19 = vsel %vm59_vm1, %v63_v11, %v64_v13  ;;  %v376_v22 = vsel %vm39_vm4, %v43_v10, %v44_v12  ;;  %v242_v23 = vpack.c.bf16 %v88_v18, %v87_v17  ;;  %v245_v26 = vpack.c.bf16 %v90_v25, %v89_v24  ;;  %v91_v27 = vld [vmem:[%s492_s1 + $0x30] sm:$0xff]  ;;  %v92_v28 = vld [vmem:[%s492_s1 + $0x38] sm:$0xff]  ;;  %v93_v32 = vld [vmem:[%s492_s1 + $0x40] sm:$0xff] }
   0x6   :  { %74 = vst.msk [vmem:[#allocation2 + $0x38] sm:$0x7f] %vm71_vm2, %v64_v13  ;;  %26 = vrot.lane.b32.xlu0 %v335_v2, %s302_s18  ;;  %28 = vrot.lane.b32.xlu1 %v17_v8, %s302_s18  ;;  %v248_v31 = vpack.c.bf16 %v92_v28, %v91_v27  ;;  %v94_v33 = vld [vmem:[%s492_s1 + $0x48] sm:$0xff]  ;;  %v95_v35 = vld [vmem:[%s492_s1 + $0x50] sm:$0xff]  ;;  %vm50_vm6 = vcmask 523265  }
   0x7   :  { %75 = vst.msk [vmem:[#allocation2 + $0x1f] sm:$0x1] %vm56_vm3, %v303_v20  ;;  %76 = vst.msk [vmem:[#allocation2 + $0x3f] sm:$0x1] %vm56_vm3, %v303_v20  ;;  %240 = vmatpush1.bf16.msra.mxu0 %v239_v16  ;;  %286 = vmatpush1.bf16.msra.mxu1 %v239_v16  ;;  %v251_v34 = vpack.c.bf16 %v94_v33, %v93_v32  ;;  %v96_v36 = vld [vmem:[%s492_s1 + $0x58] sm:$0xff]  ;;  %v97_v38 = vld [vmem:[%s492_s1 + $0x60] sm:$0xff] }
   0x8   :  { %73 = vst.msk [vmem:[#allocation2 + $0x28] sm:$0xff] %vm52_vm0, %v65_v19  ;;  %241 = vmatprep.subr.bf16.mxu0 %v301_v3  ;;  %275 = vmatprep.subr.bf16.mxu1 %v301_v3  ;;  %v254_v37 = vpack.c.bf16 %v96_v36, %v95_v35  ;;  %v98_v39 = vld [vmem:[%s492_s1 + $0x68] sm:$0xff]  ;;  %v99_v41 = vld [vmem:[%s492_s1 + $0x70] sm:$0xff]  ;;  %v100_v42 = vld [vmem:[%s492_s1 + $0x78] sm:$0xff] }
   0x9   :  { %v257_v40 = vpack.c.bf16 %v98_v39, %v97_v38  ;;  %v260_v43 = vpack.c.bf16 %v100_v42, %v99_v41  ;;  %v101_v44 = vld [vmem:[%s492_s1 + $0x80] sm:$0xff]  ;;  %v102_v45 = vld [vmem:[%s492_s1 + $0x88] sm:$0xff]  ;;  %v103_v47 = vld [vmem:[%s492_s1 + $0x90] sm:$0xff] }
   0xa   :  { %v263_v46 = vpack.c.bf16 %v102_v45, %v101_v44  ;;  %v104_v48 = vld [vmem:[%s492_s1 + $0x98] sm:$0xff]  ;;  %v105_v50 = vld [vmem:[%s492_s1 + $0xa0] sm:$0xff]  ;;  %v106_v51 = vld [vmem:[%s492_s1 + $0xa8] sm:$0xff] }
   0xb   :  { %243 = vmatpush1.bf16.msra.mxu0 %v242_v23  ;;  %287 = vmatpush1.bf16.msra.mxu1 %v242_v23  ;;  %v266_v49 = vpack.c.bf16 %v104_v48, %v103_v47  ;;  %v269_v52 = vpack.c.bf16 %v106_v51, %v105_v50  ;;  %v107_v53 = vld [vmem:[%s492_s1 + $0xb0] sm:$0xff]  ;;  %v108_v54 = vld [vmem:[%s492_s1 + $0xb8] sm:$0xff]  ;;  %v233_v2 = vld [vmem:[%s493_s2] ss:$0 sm:$0xff] }
   0xc   :  { %244 = vmatprep.subr.bf16.mxu0 %v301_v3  ;;  %276 = vmatprep.subr.bf16.mxu1 %v301_v3  ;;  %v78_v29 = vld [vmem:[#allocation2 + $0x8] sm:$0xff]  ;;  %v272_v55 = vpack.c.bf16 %v108_v54, %v107_v53 }
   0xd   :  { %234 = vmatprep.mubr.msk.f32.mxu0 %vm52_vm0, %v78_v29 }
   0xe   :  { %v80_v60 = vld [vmem:[#allocation2 + $0x18] sm:$0xff] }
   0xf   :  { %v82_v30 = vld [vmem:[#allocation2 + $0x28] sm:$0xff]  ;;  %246 = vmatpush1.bf16.msra.mxu0 %v245_v26  ;;  %288 = vmatpush1.bf16.msra.mxu1 %v245_v26  ;;  %v84_v63 = vld [vmem:[#allocation2 + $0x38] sm:$0xff] }
  0x10   :  { %236 = vmatprep.mubr.msk.f32.mxu1 %vm52_vm0, %v82_v30  ;;  %247 = vmatprep.subr.bf16.mxu0 %v301_v3 }
  0x11   :  { %277 = vmatprep.subr.bf16.mxu1 %v301_v3 }
  0x13   :  { %249 = vmatpush1.bf16.msra.mxu0 %v248_v31  ;;  %289 = vmatpush1.bf16.msra.mxu1 %v248_v31 }
  0x14   :  { %250 = vmatprep.subr.bf16.mxu0 %v301_v3  ;;  %278 = vmatprep.subr.bf16.mxu1 %v301_v3 }
  0x17   :  { %252 = vmatpush1.bf16.msra.mxu0 %v251_v34  ;;  %290 = vmatpush1.bf16.msra.mxu1 %v251_v34 }
  0x18   :  { %253 = vmatprep.subr.bf16.mxu0 %v301_v3  ;;  %279 = vmatprep.subr.bf16.mxu1 %v301_v3 }
  0x1b   :  { %255 = vmatpush1.bf16.msra.mxu0 %v254_v37  ;;  %291 = vmatpush1.bf16.msra.mxu1 %v254_v37 }
  0x1c   :  { %256 = vmatprep.subr.bf16.mxu0 %v301_v3  ;;  %280 = vmatprep.subr.bf16.mxu1 %v301_v3 }
  0x1f   :  { %258 = vmatpush1.bf16.msra.mxu0 %v257_v40  ;;  %292 = vmatpush1.bf16.msra.mxu1 %v257_v40 }
  0x20   :  { %259 = vmatprep.subr.bf16.mxu0 %v301_v3  ;;  %281 = vmatprep.subr.bf16.mxu1 %v301_v3 }
  0x23   :  { %261 = vmatpush1.bf16.msra.mxu0 %v260_v43  ;;  %293 = vmatpush1.bf16.msra.mxu1 %v260_v43 }
  0x24   :  { %262 = vmatprep.subr.bf16.mxu0 %v301_v3  ;;  %282 = vmatprep.subr.bf16.mxu1 %v301_v3 }
  0x27   :  { %264 = vmatpush1.bf16.msra.mxu0 %v263_v46  ;;  %294 = vmatpush1.bf16.msra.mxu1 %v263_v46 }
  0x28   :  { %265 = vmatprep.subr.bf16.mxu0 %v301_v3  ;;  %283 = vmatprep.subr.bf16.mxu1 %v301_v3 }
  0x2b   :  { %267 = vmatpush1.bf16.msra.mxu0 %v266_v49  ;;  %295 = vmatpush1.bf16.msra.mxu1 %v266_v49 }
  0x2c   :  { %268 = vmatprep.subr.bf16.mxu0 %v301_v3  ;;  %284 = vmatprep.subr.bf16.mxu1 %v301_v3 }
  0x2f   :  { %270 = vmatpush1.bf16.msra.mxu0 %v269_v52  ;;  %296 = vmatpush1.bf16.msra.mxu1 %v269_v52 }
  0x30   :  { %271 = vmatprep.subr.bf16.mxu0 %v301_v3  ;;  %285 = vmatprep.subr.bf16.mxu1 %v301_v3 }
  0x33   :  { %273 = vmatpush1.bf16.msra.mxu0 %v272_v55  ;;  %297 = vmatpush1.bf16.msra.mxu1 %v272_v55 }
  0x74   :  { %v23_v56 = vpop.permute.xlu0 %22  ;;  %v25_v57 = vpop.permute.xlu1 %24 }
  0x75   :  { %35 = vst.msk [vmem:[#allocation2] sm:$0xff] %vm34_vm5, %v23_v56  ;;  %36 = vst.msk [vmem:[#allocation2 + $0x10] sm:$0xff] %vm34_vm5, %v25_v57 }
  0x76   :  { %51 = vst.msk [vmem:[#allocation2] sm:$0xfe] %vm50_vm6, %v40_v4 }
  0x77   :  { %57 = vst.msk [vmem:[#allocation2] sm:$0x1] %vm56_vm3, %v303_v20 }
  0x78   :  { %53 = vst.msk [vmem:[#allocation2 + $0x10] sm:$0xff] %vm52_vm0, %v370_v21  ;;  %v27_v58 = vpop.permute.xlu0 %26  ;;  %v29_v59 = vpop.permute.xlu1 %28 }
  0x79   :  { %37 = vst.msk [vmem:[#allocation2 + $0x20] sm:$0xff] %vm34_vm5, %v27_v58  ;;  %38 = vst.msk [vmem:[#allocation2 + $0x30] sm:$0xff] %vm34_vm5, %v29_v59 }
  0x7a   :  { %54 = vst.msk [vmem:[#allocation2 + $0x20] sm:$0xfe] %vm50_vm6, %v43_v10 }
  0x7b   :  { %58 = vst.msk [vmem:[#allocation2 + $0x20] sm:$0x1] %vm56_vm3, %v303_v20 }
  0x7c   :  { %55 = vst.msk [vmem:[#allocation2 + $0x30] sm:$0xff] %vm52_vm0, %v376_v22 }
  0x7e   :  { %v77_v61 = vld [vmem:[#allocation2] sm:$0xff] }
  0x7f   :  { %193 = vmatmul.mubr.f32.vlgmr.msra.gmra.mrb[0].mxu0 %v77_v61  ;;  %v79_v62 = vld [vmem:[#allocation2 + $0x10] sm:$0xff] }
  0x80   :  { %235 = vmatprep.mubr.msk.f32.mxu0 %vm52_vm0, %v80_v60 }
  0x82   :  { %v81_v0 = vld [vmem:[#allocation2 + $0x20] sm:$0xff] }
  0x83   :  { %203 = vmatmul.mubr.f32.vlgmr.msra.gmra.mrb[0].mxu1 %v81_v0  ;;  %198 = vmatmul.mubr.f32.gmra.mrb[2].mxu0 %v79_v62  ;;  %v83_v1 = vld [vmem:[#allocation2 + $0x30] sm:$0xff] }
  0x84   :  { %237 = vmatprep.mubr.msk.f32.mxu1 %vm52_vm0, %v84_v63 }
  0x87   :  { %208 = vmatmul.mubr.f32.gmra.mrb[2].mxu1 %v83_v1 }
 0x152   :  { %v194_v3 = vpop.f32.mrb[0].mxu0 }
 0x153   :  { %v195_v4 = vadd.f32 %v233_v2, %v194_v3  ;;  %v196_v5 = vpop.f32.mrb[1].mxu0 }
 0x155   :  { %vm213_vm7 = vcmp.ge.f32.partialorder %v195_v4, 0.0  ;;  %v217_v6 = vmul.f32 0.01, %v195_v4 }
 0x156   :  { %v204_v7 = vpop.f32.mrb[0].mxu1  ;;  %v199_v8 = vpop.f32.mrb[2].mxu0 }
 0x157   :  { %v221_v9 = vsel %vm213_vm7, %v195_v4, %v217_v6  ;;  %v205_v10 = vadd.f32 %v233_v2, %v204_v7  ;;  %v206_v11 = vpop.f32.mrb[1].mxu1  ;;  %v200_v12 = vadd.f32 %v233_v2, %v199_v8  ;;  %v201_v13 = vpop.f32.mrb[3].mxu0 }
 0x158   :  { %225 = vst [vmem:[%s494_s3] sm:$0xff] %v221_v9 }
 0x159   :  { %vm215_vm8 = vcmp.ge.f32.partialorder %v205_v10, 0.0  ;;  %v219_v14 = vmul.f32 0.01, %v205_v10  ;;  %vm214_vm9 = vcmp.ge.f32.partialorder %v200_v12, 0.0  ;;  %v218_v15 = vmul.f32 0.01, %v200_v12 }
 0x15a   :  { %v209_v16 = vpop.f32.mrb[2].mxu1 }
 0x15b   :  { %v223_v17 = vsel %vm215_vm8, %v205_v10, %v219_v14  ;;  %v222_v18 = vsel %vm214_vm9, %v200_v12, %v218_v15  ;;  %v210_v19 = vadd.f32 %v233_v2, %v209_v16  ;;  %v211_v20 = vpop.f32.mrb[3].mxu1 }
 0x15c   :  { %227 = vst [vmem:[%s494_s3 + $0x10] sm:$0xff] %v223_v17  ;;  %226 = vst [vmem:[%s494_s3 + $0x8] sm:$0xff] %v222_v18 }
 0x15d   :  { %vm216_vm10 = vcmp.ge.f32.partialorder %v210_v19, 0.0  ;;  %v220_v21 = vmul.f32 0.01, %v210_v19 }
 0x15f   :  { %v224_v22 = vsel %vm216_vm10, %v210_v19, %v220_v21 }
 0x160   :  { %228 = vst [vmem:[%s494_s3 + $0x18] sm:$0xff] %v224_v22 }

</bundles_post_ra>
